<compile_context>
chip_gen: v7x
topology: tpu7x:2x2x1
jax: 0.10.0
libtpu: 0.0.40
codegen_flags: <defaults>
</compile_context>

<pallas_src>
import functools

import numpy as np
import jax
import jax.numpy as jnp
from jax.experimental import pallas as pl
from jax.experimental.pallas import tpu as pltpu


# ----------------------------------------------------------------------------
# VMEM budgeting (generation-aware)
# ----------------------------------------------------------------------------
def _vmem_capacity_bytes():
    try:
        return int(pltpu.get_tpu_info().vmem_capacity_bytes)
    except Exception:
        return 64 << 20  # conservative fallback (v7x-sized per-TC VMEM)


def _layer_footprint_bytes(tm, n_pad, k_in, n_out, out_itemsize, with_ln):
    f = 2 * tm * n_pad * 2                   # A row blocks, double-buffered, bf16
    f += n_pad * k_in * 2                    # X, resident (constant index_map)
    f += k_in * n_out * 2                    # W, resident
    f += (3 if with_ln else 1) * n_out * 4   # bias (+ gamma/beta), fetched once
    f += 2 * tm * n_out * out_itemsize       # out blocks, double-buffered
    f += n_pad * n_out * 2                   # XW scratch (bf16)
    if with_ln:
        f += tm * n_out * 4                  # f32 epilogue scratch
    return f


def _pick_tm(n_pad, k_in, n_out, out_itemsize, with_ln, budget):
    """Largest MXU-aligned row-block that fits the VMEM budget."""
    cands = []
    if n_pad <= 512:
        cands.append(n_pad)
    cands += [c for c in (512, 256, 128) if c < n_pad and n_pad % c == 0]
    for tm in cands:
        need = _layer_footprint_bytes(tm, n_pad, k_in, n_out, out_itemsize, with_ln)
        if int(need * 1.25) <= budget:
            return tm, need
    # TODO(synk): for very large graphs, k-tile the node dimension of A / XW
    #   (and/or use the block-diagonal scalar-prefetch path) instead of failing.
    raise ValueError(
        f"GCN layer does not fit VMEM budget: n_pad={n_pad}, k_in={k_in}, "
        f"n_out={n_out}, budget={budget} bytes"
    )


# ----------------------------------------------------------------------------
# Pallas kernels: fused GCN layer  out = A @ (X @ W) + b  [+ ReLU + LayerNorm]
# ----------------------------------------------------------------------------
def _gcn_layer_kernel(a_ref, x_ref, w_ref, b_ref, o_ref, xw_ref):
    """Last layer: out = A_blk @ (X @ W) + b.  XW computed once into scratch."""
    @pl.when(pl.program_id(0) == 0)
    def _stage1():
        xw_ref[...] = jnp.dot(
            x_ref[...], w_ref[...], preferred_element_type=jnp.float32
        ).astype(xw_ref.dtype)

    acc = jnp.dot(a_ref[...], xw_ref[...], preferred_element_type=jnp.float32)
    o_ref[...] = (acc + b_ref[...]).astype(o_ref.dtype)


def _gcn_layer_relu_ln_kernel(a_ref, x_ref, w_ref, b_ref, g_ref, be_ref,
                              o_ref, xw_ref, acc_ref, *, slab):
    """Non-last layer: out = LN(ReLU(A_blk @ (X @ W) + b)) * gamma + beta.

    The epilogue is chunked over `slab`-row slices of the f32 accumulator to
    bound vreg pressure; LN statistics stay in f32.
    """
    @pl.when(pl.program_id(0) == 0)
    def _stage1():
        xw_ref[...] = jnp.dot(
            x_ref[...], w_ref[...], preferred_element_type=jnp.float32
        ).astype(xw_ref.dtype)

    acc_ref[...] = jnp.dot(
        a_ref[...], xw_ref[...], preferred_element_type=jnp.float32
    )

    tm, n_out = acc_ref.shape
    # Hoist the (1, N) -> (slab, N) broadcasts out of the loop (no in-loop CSE).
    bias = jnp.broadcast_to(b_ref[...], (slab, n_out))
    gamma = jnp.broadcast_to(g_ref[...], (slab, n_out))
    beta = jnp.broadcast_to(be_ref[...], (slab, n_out))

    def body(s, carry):
        r0 = pl.multiple_of(s * slab, slab)
        h = jnp.maximum(acc_ref[pl.ds(r0, slab), :] + bias, 0.0)
        mean = jnp.mean(h, axis=-1, keepdims=True)
        var = jnp.mean(jnp.square(h - mean), axis=-1, keepdims=True)
        h = (h - mean) * jax.lax.rsqrt(var + 1e-5)
        o_ref[pl.ds(r0, slab), :] = (h * gamma + beta).astype(o_ref.dtype)
        return carry

    jax.lax.fori_loop(0, tm // slab, body, 0, unroll=True)


def gcn_layer(a, x, w, b, *, ln=None, out_dtype=jnp.float32):
    """One fused GCN layer: out = A @ (X @ W) + b  [+ ReLU + LayerNorm if ln].

    a: [Np, Np] normalized adjacency (bf16), x: [Np, K], w: [K, N], b: [N].
    Np % 128 == 0, K % 128 == 0, N % 128 == 0.
    """
    n_pad, n_pad2 = a.shape
    k_in = x.shape[1]
    n_out = w.shape[1]
    assert n_pad == n_pad2 and x.shape[0] == n_pad
    assert n_pad % 128 == 0 and k_in % 128 == 0 and n_out % 128 == 0, \
        (n_pad, k_in, n_out)

    a = a.astype(jnp.bfloat16)
    x = x.astype(jnp.bfloat16)
    w = w.astype(jnp.bfloat16)

    out_itemsize = np.dtype(out_dtype).itemsize
    with_ln = ln is not None

    hard_cap = int(_vmem_capacity_bytes() * 0.72)   # headroom for compiler scratch
    tm, need = _pick_tm(n_pad, k_in, n_out, out_itemsize, with_ln, hard_cap)
    vmem_limit = int(min(max(int(need * 1.4), 16 << 20), hard_cap))

    grid = (n_pad // tm,)

    a_spec = pl.BlockSpec((tm, n_pad), lambda i: (i, 0))
    x_spec = pl.BlockSpec((n_pad, k_in), lambda i: (0, 0))     # resident across i
    w_spec = pl.BlockSpec((k_in, n_out), lambda i: (0, 0))     # resident across i
    vec_spec = pl.BlockSpec((1, n_out), lambda i: (0, 0))      # fetched once
    out_spec = pl.BlockSpec((tm, n_out), lambda i: (i, 0))

    inputs = [a, x, w, b.reshape(1, -1).astype(jnp.float32)]
    in_specs = [a_spec, x_spec, w_spec, vec_spec]
    scratch = [pltpu.VMEM((n_pad, n_out), jnp.bfloat16)]       # resident XW

    if with_ln:
        gamma, beta = ln
        inputs += [gamma.reshape(1, -1).astype(jnp.float32),
                   beta.reshape(1, -1).astype(jnp.float32)]
        in_specs += [vec_spec, vec_spec]
        scratch.append(pltpu.VMEM((tm, n_out), jnp.float32))
        slab = 64 if n_out <= 256 else 32
        kernel = functools.partial(_gcn_layer_relu_ln_kernel, slab=slab)
    else:
        kernel = _gcn_layer_kernel

    cost = pl.CostEstimate(
        flops=2 * n_pad * k_in * n_out + 2 * n_pad * n_pad * n_out,
        transcendentals=(n_pad if with_ln else 0),
        bytes_accessed=int(
            n_pad * n_pad * 2            # A (bf16)
            + n_pad * k_in * 2           # X (bf16, once)
            + k_in * n_out * 2           # W (bf16, once)
            + (3 if with_ln else 1) * n_out * 4
            + n_pad * n_out * out_itemsize
        ),
    )

    # XW scratch is written at grid step 0 and read by all later steps, so the
    # single grid axis must be sequential ("arbitrary").
    return pl.pallas_call(
        kernel,
        out_shape=jax.ShapeDtypeStruct((n_pad, n_out), out_dtype),
        grid_spec=pltpu.PrefetchScalarGridSpec(
            num_scalar_prefetch=0,
            grid=grid,
            in_specs=in_specs,
            out_specs=out_spec,
            scratch_shapes=scratch,
        ),
        compiler_params=pltpu.CompilerParams(
            dimension_semantics=("arbitrary",),
            vmem_limit_bytes=vmem_limit,
        ),
        cost_estimate=cost,
    )(*inputs)


# ----------------------------------------------------------------------------
# Glue: normalized dense adjacency (PyG GCNConv, add_self_loops=False),
# built directly at the padded size and cast once.
# ----------------------------------------------------------------------------
def build_gcn_adj(edge_index, edge_attr, n_nodes, n_pad=None, dtype=jnp.float32):
    n_pad = n_nodes if n_pad is None else n_pad
    src = edge_index[0]
    dst = edge_index[1]
    w = edge_attr.astype(jnp.float32)
    deg = jnp.zeros((n_nodes,), jnp.float32).at[dst].add(w)
    dinv = jnp.where(deg > 0, jax.lax.rsqrt(deg), 0.0)
    norm = dinv[src] * w * dinv[dst]
    a = jnp.zeros((n_pad, n_pad), jnp.float32).at[dst, src].add(norm)
    return a.astype(dtype)   # single cast pass (pad fused into the scatter target)


# ----------------------------------------------------------------------------
# GraphLayer forward
# ----------------------------------------------------------------------------
def graph_layer_forward(params, x, edge_index, edge_attr, batch_index=None):
    # TODO(synk): batch_index ignored; plain per-row LayerNorm over features.
    n, in_dim = x.shape
    n_pad = ((n + 127) // 128) * 128     # pad node rows/cols to MXU-aligned tiles

    a = build_gcn_adj(edge_index, edge_attr, n, n_pad=n_pad, dtype=jnp.bfloat16)
    h = jnp.zeros((n_pad, in_dim), jnp.bfloat16).at[:n, :].set(
        x.astype(jnp.bfloat16))

    n_layers = len(params)
    for idx, p in enumerate(params):
        last = idx == n_layers - 1
        h = gcn_layer(
            a,
            h,
            p["w"],
            p["b"],
            ln=None if last else (p["ln_g"], p["ln_b"]),
            out_dtype=jnp.float32 if last else jnp.bfloat16,
        )
    return h[:n], edge_index, edge_attr


# Pure-JAX f32 reference (for a correctness check against the bf16 kernels).
def graph_layer_ref(params, x, edge_index, edge_attr):
    a = build_gcn_adj(edge_index, edge_attr, x.shape[0])
    h = x
    for idx, p in enumerate(params):
        h = a @ (h @ p["w"]) + p["b"]
        if idx != len(params) - 1:
            h = jnp.maximum(h, 0.0)
            mean = jnp.mean(h, axis=-1, keepdims=True)
            var = jnp.mean(jnp.square(h - mean), axis=-1, keepdims=True)
            h = (h - mean) * jax.lax.rsqrt(var + 1e-5)
            h = h * p["ln_g"] + p["ln_b"]
    return h


# ----------------------------------------------------------------------------
# Deterministic parameter init (GCNConv glorot weights, small biases, LN affine)
# ----------------------------------------------------------------------------
def init_params(key, in_channels, hidden_channels):
    dims = [in_channels] + list(hidden_channels)
    keys = jax.random.split(key, 2 * len(hidden_channels))
    params = []
    for i, (fi, fo) in enumerate(zip(dims[:-1], dims[1:])):
        kw, kb = keys[2 * i], keys[2 * i + 1]
        p = {
            "w": jax.random.normal(kw, (fi, fo), jnp.float32)
            * np.sqrt(2.0 / (fi + fo)),
            "b": jax.random.normal(kb, (fo,), jnp.float32) * 0.01,
        }
        if i != len(hidden_channels) - 1:
            p["ln_g"] = jnp.ones((fo,), jnp.float32)
            p["ln_b"] = jnp.zeros((fo,), jnp.float32)
        params.append(p)
    return params


def fully_connected_edges(graph_sizes):
    edges = []
    off = 0
    for n in graph_sizes:
        for i in range(n):
            for j in range(n):
                if i != j:
                    edges.append((off + i, off + j))
        off += n
    return np.asarray(edges, dtype=np.int32).T  # [2, E]


if __name__ == "__main__":
    key = jax.random.PRNGKey(0)
    k_x, k_e, k_p = jax.random.split(key, 3)

    in_channels = 256
    hidden_channels = [256, 128]      # feature dims kept multiples of 128

    graph_sizes = [5, 6]              # 2 graphs in the batch
    n_nodes = int(sum(graph_sizes))

    x = jax.random.normal(k_x, (n_nodes, in_channels), jnp.float32)
    edge_index = jnp.asarray(fully_connected_edges(graph_sizes))
    n_edges = edge_index.shape[1]
    edge_attr = jax.random.uniform(
        k_e, (n_edges,), jnp.float32, minval=0.5, maxval=1.5
    )
    batch_index = np.repeat(np.arange(len(graph_sizes)), graph_sizes)  # unused

    params = init_params(k_p, in_channels, hidden_channels)

    out, _, _ = graph_layer_forward(params, x, edge_index, edge_attr, batch_index)
    out = jax.block_until_ready(out)

    ref = graph_layer_ref(params, x, edge_index, edge_attr)
    max_err = float(jnp.max(jnp.abs(out - ref)))

    assert out.shape == (n_nodes, hidden_channels[-1]), out.shape
    assert bool(jnp.all(jnp.isfinite(out)))
    assert max_err < 0.35, f"max abs err vs f32 reference: {max_err}"
    print("KERNEL_OK")
</pallas_src>

<mosaic_0001>
module attributes {stable_mosaic.version = 11 : i64} {
  func.func @_gcn_layer_relu_ln_kernel(%arg0: i32, %arg1: memref<128x128xbf16, #tpu.memory_space<vmem>>, %arg2: memref<128x256xbf16, #tpu.memory_space<vmem>>, %arg3: memref<256x256xbf16, #tpu.memory_space<vmem>>, %arg4: memref<1x256xf32, #tpu.memory_space<vmem>>, %arg5: memref<1x256xf32, #tpu.memory_space<vmem>>, %arg6: memref<1x256xf32, #tpu.memory_space<vmem>>, %arg7: memref<128x256xbf16, #tpu.memory_space<vmem>>, %arg8: memref<128x256xbf16, #tpu.memory_space<vmem>>, %arg9: memref<128x256xf32, #tpu.memory_space<vmem>>) attributes {dimension_semantics = [#tpu.dimension_semantics<arbitrary>], iteration_bounds = array<i64: 1>, scalar_prefetch = 0 : i64, scratch_operands = 2 : i64, tpu.core_type = #tpu.core_type<tc>, window_params = [{transform_indices = @transform_0, window_bounds = array<i64: 128, 128>}, {pipeline_mode = #tpu.pipeline_mode<synchronous>, transform_indices = @transform_1, window_bounds = array<i64: 128, 256>}, {pipeline_mode = #tpu.pipeline_mode<synchronous>, transform_indices = @transform_2, window_bounds = array<i64: 256, 256>}, {pipeline_mode = #tpu.pipeline_mode<synchronous>, transform_indices = @transform_3, window_bounds = array<i64: 1, 256>}, {pipeline_mode = #tpu.pipeline_mode<synchronous>, transform_indices = @transform_4, window_bounds = array<i64: 1, 256>}, {pipeline_mode = #tpu.pipeline_mode<synchronous>, transform_indices = @transform_5, window_bounds = array<i64: 1, 256>}, {transform_indices = @transform_6, window_bounds = array<i64: 128, 256>}]} {
    %c0_i32 = arith.constant 0 : i32
    %0 = arith.cmpi eq, %arg0, %c0_i32 : i32
    %1 = arith.extui %0 : i1 to i32
    %c0_i32_0 = arith.constant 0 : i32
    %2 = arith.cmpi ne, %1, %c0_i32_0 : i32
    scf.if %2 {
      %c0_30 = arith.constant 0 : index
      %c0_31 = arith.constant 0 : index
      %76 = vector.load %arg2[%c0_30, %c0_31] : memref<128x256xbf16, #tpu.memory_space<vmem>>, vector<128x256xbf16>
      %c0_32 = arith.constant 0 : index
      %c0_33 = arith.constant 0 : index
      %77 = vector.load %arg3[%c0_32, %c0_33] : memref<256x256xbf16, #tpu.memory_space<vmem>>, vector<256x256xbf16>
      %cst_34 = arith.constant dense<0.000000e+00> : vector<128x256xf32>
      %78 = tpu.matmul %76, %77, %cst_34 {dimension_numbers = #tpu.dot_dimension_numbers<[1], [0], [0], [1], [0, 0, 1, 1], [], []>} : vector<128x256xbf16>, vector<256x256xbf16>, vector<128x256xf32> -> vector<128x256xf32>
      %79 = arith.truncf %78 : vector<128x256xf32> to vector<128x256xbf16>
      %c0_35 = arith.constant 0 : index
      %c0_36 = arith.constant 0 : index
      %80 = vector.load %arg8[%c0_35, %c0_36] : memref<128x256xbf16, #tpu.memory_space<vmem>>, vector<128x256xbf16>
      tpu.vector_store %arg8[%c0_35, %c0_36], %79 {strides = array<i32>} : memref<128x256xbf16, #tpu.memory_space<vmem>>, vector<128x256xbf16>,
    } else {
    }
    %c0 = arith.constant 0 : index
    %c0_1 = arith.constant 0 : index
    %3 = vector.load %arg1[%c0, %c0_1] : memref<128x128xbf16, #tpu.memory_space<vmem>>, vector<128x128xbf16>
    %c0_2 = arith.constant 0 : index
    %c0_3 = arith.constant 0 : index
    %4 = vector.load %arg8[%c0_2, %c0_3] : memref<128x256xbf16, #tpu.memory_space<vmem>>, vector<128x256xbf16>
    %cst = arith.constant dense<0.000000e+00> : vector<128x256xf32>
    %5 = tpu.matmul %3, %4, %cst {dimension_numbers = #tpu.dot_dimension_numbers<[1], [0], [0], [1], [0, 0, 1, 1], [], []>} : vector<128x128xbf16>, vector<128x256xbf16>, vector<128x256xf32> -> vector<128x256xf32>
    %c0_4 = arith.constant 0 : index
    %c0_5 = arith.constant 0 : index
    %6 = vector.load %arg9[%c0_4, %c0_5] : memref<128x256xf32, #tpu.memory_space<vmem>>, vector<128x256xf32>
    tpu.vector_store %arg9[%c0_4, %c0_5], %5 {strides = array<i32>} : memref<128x256xf32, #tpu.memory_space<vmem>>, vector<128x256xf32>,
    %c0_6 = arith.constant 0 : index
    %c0_7 = arith.constant 0 : index
    %7 = vector.load %arg4[%c0_6, %c0_7] : memref<1x256xf32, #tpu.memory_space<vmem>>, vector<1x256xf32>
    %8 = vector.shape_cast %7 : vector<1x256xf32> to vector<1x256xf32>
    %9 = vector.broadcast %8 : vector<1x256xf32> to vector<64x256xf32>
    %c0_8 = arith.constant 0 : index
    %c0_9 = arith.constant 0 : index
    %10 = vector.load %arg5[%c0_8, %c0_9] : memref<1x256xf32, #tpu.memory_space<vmem>>, vector<1x256xf32>
    %11 = vector.shape_cast %10 : vector<1x256xf32> to vector<1x256xf32>
    %12 = vector.broadcast %11 : vector<1x256xf32> to vector<64x256xf32>
    %c0_10 = arith.constant 0 : index
    %c0_11 = arith.constant 0 : index
    %13 = vector.load %arg6[%c0_10, %c0_11] : memref<1x256xf32, #tpu.memory_space<vmem>>, vector<1x256xf32>
    %14 = vector.shape_cast %13 : vector<1x256xf32> to vector<1x256xf32>
    %15 = vector.broadcast %14 : vector<1x256xf32> to vector<64x256xf32>
    %c0_i32_12 = arith.constant 0 : i32
    %c64_i32 = arith.constant 64 : i32
    %16 = arith.muli %c0_i32_12, %c64_i32 : i32
    %17 = tpu.assume_multiple %16, 64 : i32
    %18 = arith.index_cast %17 : i32 to index
    %c0_13 = arith.constant 0 : index
    %19 = vector.load %arg9[%18, %c0_13] : memref<128x256xf32, #tpu.memory_space<vmem>>, vector<64x256xf32>
    %20 = arith.addf %19, %9 : vector<64x256xf32>
    %cst_14 = arith.constant 0.000000e+00 : f32
    %21 = vector.broadcast %cst_14 : f32 to vector<64x256xf32>
    %22 = arith.maximumf %20, %21 : vector<64x256xf32>
    %cst_15 = arith.constant dense<0.000000e+00> : vector<64xf32>
    %23 = vector.multi_reduction <add>, %22, %cst_15 [1] : vector<64x256xf32> to vector<64xf32>
    %24 = vector.shape_cast %23 : vector<64xf32> to vector<64x1xf32>
    %cst_16 = arith.constant 2.560000e+02 : f32
    %25 = vector.broadcast %cst_16 : f32 to vector<64x1xf32>
    %26 = arith.divf %24, %25 : vector<64x1xf32>
    %27 = vector.broadcast %26 : vector<64x1xf32> to vector<64x256xf32>
    %28 = arith.subf %22, %27 : vector<64x256xf32>
    %29 = arith.mulf %28, %28 : vector<64x256xf32>
    %cst_17 = arith.constant dense<0.000000e+00> : vector<64xf32>
    %30 = vector.multi_reduction <add>, %29, %cst_17 [1] : vector<64x256xf32> to vector<64xf32>
    %31 = vector.shape_cast %30 : vector<64xf32> to vector<64x1xf32>
    %cst_18 = arith.constant 2.560000e+02 : f32
    %32 = vector.broadcast %cst_18 : f32 to vector<64x1xf32>
    %33 = arith.divf %31, %32 : vector<64x1xf32>
    %34 = vector.broadcast %26 : vector<64x1xf32> to vector<64x256xf32>
    %35 = arith.subf %22, %34 : vector<64x256xf32>
    %cst_19 = arith.constant 9.99999974E-6 : f32
    %36 = vector.broadcast %cst_19 : f32 to vector<64x1xf32>
    %37 = arith.addf %33, %36 : vector<64x1xf32>
    %38 = math.rsqrt %37 : vector<64x1xf32>
    %39 = vector.broadcast %38 : vector<64x1xf32> to vector<64x256xf32>
    %40 = arith.mulf %35, %39 : vector<64x256xf32>
    %41 = arith.mulf %40, %12 : vector<64x256xf32>
    %42 = arith.addf %41, %15 : vector<64x256xf32>
    %43 = arith.truncf %42 : vector<64x256xf32> to vector<64x256xbf16>
    %44 = arith.index_cast %17 : i32 to index
    %c0_20 = arith.constant 0 : index
    %45 = vector.load %arg7[%44, %c0_20] : memref<128x256xbf16, #tpu.memory_space<vmem>>, vector<64x256xbf16>
    tpu.vector_store %arg7[%44, %c0_20], %43 {strides = array<i32>} : memref<128x256xbf16, #tpu.memory_space<vmem>>, vector<64x256xbf16>,
    %c1_i32 = arith.constant 1 : i32
    %c64_i32_21 = arith.constant 64 : i32
    %46 = arith.muli %c1_i32, %c64_i32_21 : i32
    %47 = tpu.assume_multiple %46, 64 : i32
    %48 = arith.index_cast %47 : i32 to index
    %c0_22 = arith.constant 0 : index
    %49 = vector.load %arg9[%48, %c0_22] : memref<128x256xf32, #tpu.memory_space<vmem>>, vector<64x256xf32>
    %50 = arith.addf %49, %9 : vector<64x256xf32>
    %cst_23 = arith.constant 0.000000e+00 : f32
    %51 = vector.broadcast %cst_23 : f32 to vector<64x256xf32>
    %52 = arith.maximumf %50, %51 : vector<64x256xf32>
    %cst_24 = arith.constant dense<0.000000e+00> : vector<64xf32>
    %53 = vector.multi_reduction <add>, %52, %cst_24 [1] : vector<64x256xf32> to vector<64xf32>
    %54 = vector.shape_cast %53 : vector<64xf32> to vector<64x1xf32>
    %cst_25 = arith.constant 2.560000e+02 : f32
    %55 = vector.broadcast %cst_25 : f32 to vector<64x1xf32>
    %56 = arith.divf %54, %55 : vector<64x1xf32>
    %57 = vector.broadcast %56 : vector<64x1xf32> to vector<64x256xf32>
    %58 = arith.subf %52, %57 : vector<64x256xf32>
    %59 = arith.mulf %58, %58 : vector<64x256xf32>
    %cst_26 = arith.constant dense<0.000000e+00> : vector<64xf32>
    %60 = vector.multi_reduction <add>, %59, %cst_26 [1] : vector<64x256xf32> to vector<64xf32>
    %61 = vector.shape_cast %60 : vector<64xf32> to vector<64x1xf32>
    %cst_27 = arith.constant 2.560000e+02 : f32
    %62 = vector.broadcast %cst_27 : f32 to vector<64x1xf32>
    %63 = arith.divf %61, %62 : vector<64x1xf32>
    %64 = vector.broadcast %56 : vector<64x1xf32> to vector<64x256xf32>
    %65 = arith.subf %52, %64 : vector<64x256xf32>
    %cst_28 = arith.constant 9.99999974E-6 : f32
    %66 = vector.broadcast %cst_28 : f32 to vector<64x1xf32>
    %67 = arith.addf %63, %66 : vector<64x1xf32>
    %68 = math.rsqrt %67 : vector<64x1xf32>
    %69 = vector.broadcast %68 : vector<64x1xf32> to vector<64x256xf32>
    %70 = arith.mulf %65, %69 : vector<64x256xf32>
    %71 = arith.mulf %70, %12 : vector<64x256xf32>
    %72 = arith.addf %71, %15 : vector<64x256xf32>
    %73 = arith.truncf %72 : vector<64x256xf32> to vector<64x256xbf16>
    %74 = arith.index_cast %47 : i32 to index
    %c0_29 = arith.constant 0 : index
    %75 = vector.load %arg7[%74, %c0_29] : memref<128x256xbf16, #tpu.memory_space<vmem>>, vector<64x256xbf16>
    tpu.vector_store %arg7[%74, %c0_29], %73 {strides = array<i32>} : memref<128x256xbf16, #tpu.memory_space<vmem>>, vector<64x256xbf16>,
    %c2_i32 = arith.constant 2 : i32
    return
  }
  func.func @transform_0(%arg0: i32) -> (i32, i32) {
    %c0_i32 = arith.constant 0 : i32
    %c0_i32_0 = arith.constant 0 : i32
    return %arg0, %c0_i32 : i32, i32
  }
  func.func @transform_1(%arg0: i32) -> (i32, i32) {
    %c0_i32 = arith.constant 0 : i32
    %c0_i32_0 = arith.constant 0 : i32
    %c0_i32_1 = arith.constant 0 : i32
    return %c0_i32, %c0_i32_0 : i32, i32
  }
  func.func @transform_2(%arg0: i32) -> (i32, i32) {
    %c0_i32 = arith.constant 0 : i32
    %c0_i32_0 = arith.constant 0 : i32
    %c0_i32_1 = arith.constant 0 : i32
    return %c0_i32, %c0_i32_0 : i32, i32
  }
  func.func @transform_3(%arg0: i32) -> (i32, i32) {
    %c0_i32 = arith.constant 0 : i32
    %c0_i32_0 = arith.constant 0 : i32
    %c0_i32_1 = arith.constant 0 : i32
    return %c0_i32, %c0_i32_0 : i32, i32
  }
  func.func @transform_4(%arg0: i32) -> (i32, i32) {
    %c0_i32 = arith.constant 0 : i32
    %c0_i32_0 = arith.constant 0 : i32
    %c0_i32_1 = arith.constant 0 : i32
    return %c0_i32, %c0_i32_0 : i32, i32
  }
  func.func @transform_5(%arg0: i32) -> (i32, i32) {
    %c0_i32 = arith.constant 0 : i32
    %c0_i32_0 = arith.constant 0 : i32
    %c0_i32_1 = arith.constant 0 : i32
    return %c0_i32, %c0_i32_0 : i32, i32
  }
  func.func @transform_6(%arg0: i32) -> (i32, i32) {
    %c0_i32 = arith.constant 0 : i32
    %c0_i32_0 = arith.constant 0 : i32
    return %arg0, %c0_i32 : i32, i32
  }
}

</mosaic_0001>

<bundles_post_ra>
// kernel: tpu_custom_call.1
= control target key start
LH: loop header
LB: loop body
LE: loop exit
PB: predicated region body
PF: predicated region fallthrough
CT: control target
= control target key end

     0   :  { %11 = vsyncpa [#allocation5], 0  ;;  %s2246_s0 = inlined_call_operand.hbm [shape: bf16[128,128], index: 0, kind: input, shape index: {}]   ;;  %s2247_s1 = inlined_call_operand.hbm [shape: bf16[128,256], index: 1, kind: input, shape index: {}]   ;;  %s2248_s2 = inlined_call_operand.hbm [shape: bf16[256,256], index: 2, kind: input, shape index: {}]   ;;  %s2249_s3 = inlined_call_operand.vmem [shape: f32[1,256], index: 3, kind: input, shape index: {}]   ;;  %s2250_s4 = inlined_call_operand.vmem [shape: f32[1,256], index: 4, kind: input, shape index: {}]   ;;  %s2251_s5 = inlined_call_operand.vmem [shape: f32[1,256], index: 5, kind: input, shape index: {}]   ;;  %s2252_s6 = inlined_call_operand.hbm [shape: bf16[128,256], index: 6, kind: output, shape index: {}]  }
   0x1   :  { %12 = vsyncpa [#allocation8], 0 }
   0x2   :  { %13 = vsyncpa [#allocation6], 0  ;;  %s1626_s21 = smov [#allocation7]   ;;  %s1532_s25 = scalar_lea.hbm %s2247_s1, 2048 }
   0x3   :  { %s31_s22 = sshll.u32 %s1626_s21, 4  ;;  %p1533_p0 = scmp.ne.s32.totalorder %s2247_s1, %s1532_s25  ;;  %s32_s22 = int_to_ptr.vmem [resolvable:$true] %s31_s22 }
   0x4   :  { %p1536_p1 = scmp.lt.u32.totalorder %s1532_s25, %s2247_s1 }
   0x6   :  { %p1538_p2 = pnand %p1536_p1, %p1533_p0 }
   0x8   :  { %1541 = shalt.err (!%p1538_p2)
}
   0x9   :  { %s1542_s30 = scalar_lea.vmem %s32_s22, 2048  ;;  %p1547_p4 = scmp.lt.s32.totalorder %s32_s22, %s32_s22 }
   0xa   :  { %p1543_p3 = scmp.ne.s32.totalorder %s32_s22, %s1542_s30  ;;  %p1548_p5 = scmp.lt.s32.totalorder %s1542_s30, %s1542_s30 }
   0xc   :  { %p1549_p6 = por %p1548_p5, %p1547_p4 }
   0xe   :  { %p1550_p7 = pnand %p1549_p6, %p1543_p3 }
  0x10   :  { %1553 = shalt.err (!%p1550_p7)
}
  0x11   :  { %s1627_s7 = smov 128   ;;  %s1628_s8 = smov 8  }
  0x12   :  { %37 = dma.hbm_to_vmem [thread:$0]  %s2247_s1, 2048, %s32_s22, [#allocation8], %s1627_s7, %s1627_s7, %s1628_s8  }
  0x13   :  { %s1629_s11 = smov [#allocation4]   ;;  %s1554_s15 = scalar_lea.hbm %s2246_s0, 1024 }
  0x14   :  { %s19_s12 = sshll.u32 %s1629_s11, 4  ;;  %p1555_p8 = scmp.ne.s32.totalorder %s2246_s0, %s1554_s15  ;;  %s20_s12 = int_to_ptr.vmem [resolvable:$true] %s19_s12 }
  0x15   :  { %p1558_p9 = scmp.lt.u32.totalorder %s1554_s15, %s2246_s0 }
  0x17   :  { %p1560_p10 = pnand %p1558_p9, %p1555_p8 }
  0x19   :  { %1563 = shalt.err (!%p1560_p10)
}
  0x1a   :  { %s1564_s20 = scalar_lea.vmem %s20_s12, 1024  ;;  %p1569_p12 = scmp.lt.s32.totalorder %s20_s12, %s20_s12 }
  0x1b   :  { %p1565_p11 = scmp.ne.s32.totalorder %s20_s12, %s1564_s20  ;;  %p1570_p13 = scmp.lt.s32.totalorder %s1564_s20, %s1564_s20 }
  0x1d   :  { %p1571_p0 = por %p1570_p13, %p1569_p12 }
  0x1f   :  { %p1572_p1 = pnand %p1571_p0, %p1565_p11 }
  0x21   :  { %1575 = shalt.err (!%p1572_p1)
}
  0x22   :  { %s1630_s1 = smov 64   ;;  %s1631_s21 = smov 4  }
  0x23   :  { %25 = dma.hbm_to_vmem [thread:$0]  %s2246_s0, 1024, %s20_s12, [#allocation5], %s1630_s1, %s1630_s1, %s1631_s21  }
  0x24   :  { %s1632_s24 = smov [#allocation9]   ;;  %s1576_s28 = scalar_lea.hbm %s2248_s2, 4096 }
  0x25   :  { %s43_s25 = sshll.u32 %s1632_s24, 4  ;;  %p1577_p2 = scmp.ne.s32.totalorder %s2248_s2, %s1576_s28  ;;  %s44_s25 = int_to_ptr.vmem [resolvable:$true] %s43_s25 }
  0x26   :  { %p1580_p3 = scmp.lt.u32.totalorder %s1576_s28, %s2248_s2 }
  0x28   :  { %p1582_p4 = pnand %p1580_p3, %p1577_p2 }
  0x2a   :  { %1585 = shalt.err (!%p1582_p4)
}
  0x2b   :  { %s1586_s11 = scalar_lea.vmem %s44_s25, 4096  ;;  %p1591_p6 = scmp.lt.s32.totalorder %s44_s25, %s44_s25 }
  0x2c   :  { %p1587_p5 = scmp.ne.s32.totalorder %s44_s25, %s1586_s11  ;;  %p1592_p7 = scmp.lt.s32.totalorder %s1586_s11, %s1586_s11 }
  0x2e   :  { %p1593_p8 = por %p1592_p7, %p1591_p6 }
  0x30   :  { %p1594_p9 = pnand %p1593_p8, %p1587_p5 }
  0x32   :  { %1597 = shalt.err (!%p1594_p9)
}
  0x33   :  { %49 = dma.hbm_to_vmem [thread:$0]  %s2248_s2, 4096, %s44_s25, [#allocation8], %s1627_s7, %s1627_s7, %s1628_s8  }
  0x34   :  { %1620 = dma.done.wait [#allocation5], 1024  }
  0x35   :  { %1621 = vsyncadd [#allocation5], 4294966272 }
  0x36   :  { %1622 = dma.done.wait [#allocation8], 6144  }
  0x37   :  { %1623 = vsyncadd [#allocation8], 4294961152  ;;  %v1420_v0 = vld [vmem:[#allocation9 + $0x4] ss:$8 sps:$4 sm:$0xff]   ;;  %v1422_v1 = vld [vmem:[#allocation9] ss:$8 sps:$4 sm:$0xff]  }
  0x38   :  { %358 = vmatprep.subr.bf16.mxu0 %v1420_v0  ;;  %v1423_v2 = vld [vmem:[#allocation9 + $0x14] ss:$8 sps:$4 sm:$0xff]   ;;  %v1425_v3 = vld [vmem:[#allocation9 + $0x10] ss:$8 sps:$4 sm:$0xff]   ;;  %v1426_v4 = vld [vmem:[#allocation9 + $0x24] ss:$8 sps:$4 sm:$0xff]  }
  0x39   :  { %359 = vmatpush1.bf16.msra.mxu0 %v1422_v1  ;;  %v1428_v5 = vld [vmem:[#allocation9 + $0x20] ss:$8 sps:$4 sm:$0xff]   ;;  %v1429_v6 = vld [vmem:[#allocation9 + $0x34] ss:$8 sps:$4 sm:$0xff]   ;;  %v1431_v7 = vld [vmem:[#allocation9 + $0x30] ss:$8 sps:$4 sm:$0xff]  }
  0x3a   :  { %360 = vmatprep.subr.bf16.mxu0 %v1423_v2  ;;  %v1432_v8 = vld [vmem:[#allocation9 + $0x44] ss:$8 sps:$4 sm:$0xff]   ;;  %v1434_v9 = vld [vmem:[#allocation9 + $0x40] ss:$8 sps:$4 sm:$0xff]   ;;  %v1435_v10 = vld [vmem:[#allocation9 + $0x54] ss:$8 sps:$4 sm:$0xff]  }
  0x3b   :  { %v1437_v11 = vld [vmem:[#allocation9 + $0x50] ss:$8 sps:$4 sm:$0xff]   ;;  %v1438_v12 = vld [vmem:[#allocation9 + $0x64] ss:$8 sps:$4 sm:$0xff]   ;;  %v1440_v14 = vld [vmem:[#allocation9 + $0x60] ss:$8 sps:$4 sm:$0xff]  }
  0x3c   :  { %v1470_v13 = vld [vmem:[#allocation7 + $0x4] ss:$8 sps:$4 sm:$0xff]   ;;  %v1441_v15 = vld [vmem:[#allocation9 + $0x74] ss:$8 sps:$4 sm:$0xff]   ;;  %v1443_v16 = vld [vmem:[#allocation9 + $0x70] ss:$8 sps:$4 sm:$0xff]  }
  0x3d   :  { %361 = vmatpush1.bf16.msra.mxu0 %v1425_v3  ;;  %390 = vmatprep.mubr.bf16.mxu0 %v1470_v13  ;;  %v1444_v17 = vld [vmem:[#allocation9 + $0x84] ss:$8 sps:$4 sm:$0xff]   ;;  %v1446_v18 = vld [vmem:[#allocation9 + $0x80] ss:$8 sps:$4 sm:$0xff]   ;;  %v1447_v19 = vld [vmem:[#allocation9 + $0x94] ss:$8 sps:$4 sm:$0xff]  }
  0x3e   :  { %362 = vmatprep.subr.bf16.mxu0 %v1426_v4  ;;  %v1449_v20 = vld [vmem:[#allocation9 + $0x90] ss:$8 sps:$4 sm:$0xff]   ;;  %v1450_v21 = vld [vmem:[#allocation9 + $0xa4] ss:$8 sps:$4 sm:$0xff]   ;;  %v1452_v22 = vld [vmem:[#allocation9 + $0xa0] ss:$8 sps:$4 sm:$0xff]  }
  0x3f   :  { %v1453_v23 = vld [vmem:[#allocation9 + $0xb4] ss:$8 sps:$4 sm:$0xff]   ;;  %v1455_v24 = vld [vmem:[#allocation9 + $0xb0] ss:$8 sps:$4 sm:$0xff]   ;;  %v1456_v25 = vld [vmem:[#allocation9 + $0xc4] ss:$8 sps:$4 sm:$0xff]  }
  0x40   :  { %v1458_v26 = vld [vmem:[#allocation9 + $0xc0] ss:$8 sps:$4 sm:$0xff]   ;;  %v1459_v27 = vld [vmem:[#allocation9 + $0xd4] ss:$8 sps:$4 sm:$0xff]   ;;  %v1461_v28 = vld [vmem:[#allocation9 + $0xd0] ss:$8 sps:$4 sm:$0xff]  }
  0x41   :  { %363 = vmatpush1.bf16.msra.mxu0 %v1428_v5  ;;  %v1462_v29 = vld [vmem:[#allocation9 + $0xe4] ss:$8 sps:$4 sm:$0xff]   ;;  %v1464_v30 = vld [vmem:[#allocation9 + $0xe0] ss:$8 sps:$4 sm:$0xff]   ;;  %v1465_v31 = vld [vmem:[#allocation9 + $0xf4] ss:$8 sps:$4 sm:$0xff]  }
  0x42   :  { %364 = vmatprep.subr.bf16.mxu0 %v1429_v6  ;;  %v1467_v32 = vld [vmem:[#allocation9 + $0xf0] ss:$8 sps:$4 sm:$0xff]   ;;  %v1468_v33 = vld [vmem:[#allocation7] ss:$8 sps:$4 sm:$0xff]   ;;  %v1471_v34 = vld [vmem:[#allocation7 + $0x14] ss:$8 sps:$4 sm:$0xff]  }
  0x43   :  { %v1473_v35 = vld [vmem:[#allocation7 + $0x10] ss:$8 sps:$4 sm:$0xff]   ;;  %v1474_v36 = vld [vmem:[#allocation7 + $0x24] ss:$8 sps:$4 sm:$0xff]   ;;  %v1476_v37 = vld [vmem:[#allocation7 + $0x20] ss:$8 sps:$4 sm:$0xff]  }
  0x44   :  { %v1477_v38 = vld [vmem:[#allocation7 + $0x34] ss:$8 sps:$4 sm:$0xff]   ;;  %v1479_v39 = vld [vmem:[#allocation7 + $0x30] ss:$8 sps:$4 sm:$0xff]   ;;  %v1480_v40 = vld [vmem:[#allocation7 + $0x44] ss:$8 sps:$4 sm:$0xff]  }
  0x45   :  { %365 = vmatpush1.bf16.msra.mxu0 %v1431_v7  ;;  %v1482_v41 = vld [vmem:[#allocation7 + $0x40] ss:$8 sps:$4 sm:$0xff]   ;;  %v1483_v42 = vld [vmem:[#allocation7 + $0x54] ss:$8 sps:$4 sm:$0xff]   ;;  %v1485_v43 = vld [vmem:[#allocation7 + $0x50] ss:$8 sps:$4 sm:$0xff]  }
  0x46   :  { %366 = vmatprep.subr.bf16.mxu0 %v1432_v8  ;;  %v1486_v44 = vld [vmem:[#allocation7 + $0x64] ss:$8 sps:$4 sm:$0xff]   ;;  %v1488_v45 = vld [vmem:[#allocation7 + $0x60] ss:$8 sps:$4 sm:$0xff]   ;;  %v1489_v46 = vld [vmem:[#allocation7 + $0x74] ss:$8 sps:$4 sm:$0xff]  }
  0x47   :  { %v1491_v47 = vld [vmem:[#allocation7 + $0x70] ss:$8 sps:$4 sm:$0xff]   ;;  %v1633_v48 = vmov 0  }
  0x48   :  { %615 = vmatprep.mubr.bf16.mxu1 %v1633_v48 }
  0x49   :  { %367 = vmatpush1.bf16.msra.mxu0 %v1434_v9 }
  0x4a   :  { %368 = vmatprep.subr.bf16.mxu0 %v1435_v10 }
  0x4d   :  { %369 = vmatpush1.bf16.msra.mxu0 %v1437_v11 }
  0x4e   :  { %370 = vmatprep.subr.bf16.mxu0 %v1438_v12 }
  0x51   :  { %371 = vmatpush1.bf16.msra.mxu0 %v1440_v14 }
  0x52   :  { %372 = vmatprep.subr.bf16.mxu0 %v1441_v15 }
  0x55   :  { %373 = vmatpush1.bf16.msra.mxu0 %v1443_v16 }
  0x56   :  { %374 = vmatprep.subr.bf16.mxu0 %v1444_v17 }
  0x59   :  { %375 = vmatpush1.bf16.msra.mxu0 %v1446_v18 }
  0x5a   :  { %376 = vmatprep.subr.bf16.mxu0 %v1447_v19 }
  0x5d   :  { %377 = vmatpush1.bf16.msra.mxu0 %v1449_v20 }
  0x5e   :  { %378 = vmatprep.subr.bf16.mxu0 %v1450_v21 }
  0x61   :  { %379 = vmatpush1.bf16.msra.mxu0 %v1452_v22 }
  0x62   :  { %380 = vmatprep.subr.bf16.mxu0 %v1453_v23 }
  0x65   :  { %381 = vmatpush1.bf16.msra.mxu0 %v1455_v24 }
  0x66   :  { %382 = vmatprep.subr.bf16.mxu0 %v1456_v25 }
  0x69   :  { %383 = vmatpush1.bf16.msra.mxu0 %v1458_v26 }
  0x6a   :  { %384 = vmatprep.subr.bf16.mxu0 %v1459_v27 }
  0x6d   :  { %385 = vmatpush1.bf16.msra.mxu0 %v1461_v28 }
  0x6e   :  { %386 = vmatprep.subr.bf16.mxu0 %v1462_v29 }
  0x71   :  { %387 = vmatpush1.bf16.msra.mxu0 %v1464_v30 }
  0x72   :  { %388 = vmatprep.subr.bf16.mxu0 %v1465_v31 }
  0x75   :  { %389 = vmatpush1.bf16.msra.mxu0 %v1467_v32 }
  0x78   :  { %391 = vmatmul.mubr.bf16.vlgmr.msra.gmra.mrb[0].mxu0 %v1468_v33  ;;  %v1492_v33 = vld [vmem:[#allocation4] sm:$0xff]  }
  0x79   :  { %400 = vmatprep.mubr.bf16.mxu0 %v1471_v34  ;;  %v1493_v34 = vld [vmem:[#allocation4 + $0x8] sm:$0xff]  }
  0x80   :  { %401 = vmatmul.mubr.bf16.gmra.mrb[4].mxu0 %v1473_v35  ;;  %v1494_v35 = vld [vmem:[#allocation4 + $0x10] sm:$0xff]  }
  0x81   :  { %410 = vmatprep.mubr.bf16.mxu0 %v1474_v36  ;;  %v1495_v36 = vld [vmem:[#allocation4 + $0x18] sm:$0xff]  }
  0x88   :  { %411 = vmatmul.mubr.bf16.gmra.mrb[8].mxu0 %v1476_v37  ;;  %v1496_v37 = vld [vmem:[#allocation4 + $0x20] sm:$0xff]  }
  0x89   :  { %420 = vmatprep.mubr.bf16.mxu0 %v1477_v38  ;;  %v1497_v38 = vld [vmem:[#allocation4 + $0x28] sm:$0xff]  }
  0x90   :  { %421 = vmatmul.mubr.bf16.gmra.mrb[12].mxu0 %v1479_v39  ;;  %v1498_v39 = vld [vmem:[#allocation4 + $0x30] sm:$0xff]  }
  0x91   :  { %430 = vmatprep.mubr.bf16.mxu0 %v1480_v40  ;;  %v1499_v40 = vld [vmem:[#allocation4 + $0x38] sm:$0xff]  }
  0x98   :  { %431 = vmatmul.mubr.bf16.gmra.mrb[16].mxu0 %v1482_v41  ;;  %v730_v41 = vlaneseq }
  0x99   :  { %440 = vmatprep.mubr.bf16.mxu0 %v1483_v42 }
  0x9a   :  { %v731_v42 = vshrl.u32 %v730_v41, 7 }
  0xa0   :  { %441 = vmatmul.mubr.bf16.gmra.mrb[20].mxu0 %v1485_v43  ;;  %v1720_v43 = vsub.s32 0, %v731_v42 }
  0xa1   :  { %450 = vmatprep.mubr.bf16.mxu0 %v1486_v44  ;;  %v728_v44 = vld [vmem:[%s2249_s3] sm:$0x3] }
  0xa8   :  { %451 = vmatmul.mubr.bf16.gmra.mrb[24].mxu0 %v1488_v45  ;;  %v1725_v45 = vsub.s32 1, %v731_v42 }
  0xa9   :  { %460 = vmatprep.mubr.bf16.mxu0 %v1489_v46  ;;  %v1728_v46 = vrot.slane %v728_v44, %v1720_v43 }
  0xb0   :  { %461 = vmatmul.mubr.bf16.gmra.mrb[28].mxu0 %v1491_v47  ;;  %v1731_v47 = vrot.slane %v728_v44, %v1725_v45 }
 0x14b   :  { %v392_v49 = vpop.f32.mrb[0].mxu0 }
 0x14c   :  { %v394_v50 = vpop.f32.mrb[1].mxu0 }
 0x14d   :  { %v396_v51 = vpop.f32.mrb[2].mxu0 }
 0x14e   :  { %v471_v52 = vpack.c.bf16 %v396_v51, %v392_v49  ;;  %v398_v53 = vpop.f32.mrb[3].mxu0 }
 0x14f   :  { %v472_v54 = vpack.c.bf16 %v398_v53, %v394_v50 }
 0x151   :  { %583 = vmatprep.subr.bf16.mxu1 %v472_v54 }
 0x152   :  { %584 = vmatpush1.bf16.msra.mxu1 %v471_v52 }
 0x153   :  { %v402_v55 = vpop.f32.mrb[4].mxu0 }
 0x154   :  { %v404_v56 = vpop.f32.mrb[5].mxu0 }
 0x155   :  { %v406_v57 = vpop.f32.mrb[6].mxu0 }
 0x156   :  { %v473_v58 = vpack.c.bf16 %v406_v57, %v402_v55  ;;  %v408_v59 = vpop.f32.mrb[7].mxu0 }
 0x157   :  { %v474_v60 = vpack.c.bf16 %v408_v59, %v404_v56 }
 0x159   :  { %585 = vmatprep.subr.bf16.mxu1 %v474_v60 }
 0x15a   :  { %586 = vmatpush1.bf16.msra.mxu1 %v473_v58 }
 0x15b   :  { %v412_v61 = vpop.f32.mrb[8].mxu0 }
 0x15c   :  { %v414_v62 = vpop.f32.mrb[9].mxu0 }
 0x15d   :  { %v416_v63 = vpop.f32.mrb[10].mxu0 }
 0x15e   :  { %v475_v0 = vpack.c.bf16 %v416_v63, %v412_v61  ;;  %v418_v1 = vpop.f32.mrb[11].mxu0 }
 0x15f   :  { %v476_v2 = vpack.c.bf16 %v418_v1, %v414_v62 }
 0x161   :  { %587 = vmatprep.subr.bf16.mxu1 %v476_v2 }
 0x162   :  { %588 = vmatpush1.bf16.msra.mxu1 %v475_v0 }
 0x163   :  { %v422_v3 = vpop.f32.mrb[12].mxu0 }
 0x164   :  { %v424_v4 = vpop.f32.mrb[13].mxu0 }
 0x165   :  { %v426_v5 = vpop.f32.mrb[14].mxu0 }
 0x166   :  { %v477_v6 = vpack.c.bf16 %v426_v5, %v422_v3  ;;  %v428_v7 = vpop.f32.mrb[15].mxu0 }
 0x167   :  { %v478_v8 = vpack.c.bf16 %v428_v7, %v424_v4 }
 0x169   :  { %589 = vmatprep.subr.bf16.mxu1 %v478_v8 }
 0x16a   :  { %590 = vmatpush1.bf16.msra.mxu1 %v477_v6 }
 0x16b   :  { %v432_v9 = vpop.f32.mrb[16].mxu0 }
 0x16c   :  { %v434_v10 = vpop.f32.mrb[17].mxu0 }
 0x16d   :  { %v436_v11 = vpop.f32.mrb[18].mxu0 }
 0x16e   :  { %v479_v12 = vpack.c.bf16 %v436_v11, %v432_v9  ;;  %v438_v13 = vpop.f32.mrb[19].mxu0 }
 0x16f   :  { %v480_v14 = vpack.c.bf16 %v438_v13, %v434_v10 }
 0x171   :  { %591 = vmatprep.subr.bf16.mxu1 %v480_v14 }
 0x172   :  { %592 = vmatpush1.bf16.msra.mxu1 %v479_v12 }
 0x173   :  { %v442_v15 = vpop.f32.mrb[20].mxu0 }
 0x174   :  { %v444_v16 = vpop.f32.mrb[21].mxu0 }
 0x175   :  { %v446_v17 = vpop.f32.mrb[22].mxu0 }
 0x176   :  { %v481_v18 = vpack.c.bf16 %v446_v17, %v442_v15  ;;  %v448_v19 = vpop.f32.mrb[23].mxu0 }
 0x177   :  { %v482_v20 = vpack.c.bf16 %v448_v19, %v444_v16 }
 0x179   :  { %593 = vmatprep.subr.bf16.mxu1 %v482_v20 }
 0x17a   :  { %594 = vmatpush1.bf16.msra.mxu1 %v481_v18 }
 0x17b   :  { %v452_v21 = vpop.f32.mrb[24].mxu0 }
 0x17c   :  { %v454_v22 = vpop.f32.mrb[25].mxu0 }
 0x17d   :  { %v456_v23 = vpop.f32.mrb[26].mxu0 }
 0x17e   :  { %v483_v24 = vpack.c.bf16 %v456_v23, %v452_v21  ;;  %v458_v25 = vpop.f32.mrb[27].mxu0 }
 0x17f   :  { %v484_v26 = vpack.c.bf16 %v458_v25, %v454_v22 }
 0x181   :  { %595 = vmatprep.subr.bf16.mxu1 %v484_v26 }
 0x182   :  { %596 = vmatpush1.bf16.msra.mxu1 %v483_v24 }
 0x183   :  { %v462_v27 = vpop.f32.mrb[28].mxu0 }
 0x184   :  { %v464_v28 = vpop.f32.mrb[29].mxu0 }
 0x185   :  { %v466_v29 = vpop.f32.mrb[30].mxu0 }
 0x186   :  { %v485_v30 = vpack.c.bf16 %v466_v29, %v462_v27  ;;  %v468_v31 = vpop.f32.mrb[31].mxu0 }
 0x187   :  { %v486_v32 = vpack.c.bf16 %v468_v31, %v464_v28 }
 0x189   :  { %597 = vmatprep.subr.bf16.mxu1 %v486_v32 }
 0x18a   :  { %598 = vmatpush1.bf16.msra.mxu1 %v485_v30 }
 0x18d   :  { %616 = vmatmul.mubr.bf16.vlgmr.msra.gmra.mrb[0].mxu1 %v1492_v33 }
 0x18e   :  { %625 = vmatprep.mubr.bf16.mxu1 %v1633_v48 }
 0x195   :  { %626 = vmatmul.mubr.bf16.gmra.mrb[4].mxu1 %v1493_v34 }
 0x196   :  { %635 = vmatprep.mubr.bf16.mxu1 %v1633_v48 }
 0x19d   :  { %636 = vmatmul.mubr.bf16.gmra.mrb[8].mxu1 %v1494_v35 }
 0x19e   :  { %645 = vmatprep.mubr.bf16.mxu1 %v1633_v48 }
 0x1a5   :  { %646 = vmatmul.mubr.bf16.gmra.mrb[12].mxu1 %v1495_v36 }
 0x1a6   :  { %655 = vmatprep.mubr.bf16.mxu1 %v1633_v48 }
 0x1ad   :  { %656 = vmatmul.mubr.bf16.gmra.mrb[16].mxu1 %v1496_v37 }
 0x1ae   :  { %665 = vmatprep.mubr.bf16.mxu1 %v1633_v48 }
 0x1b5   :  { %666 = vmatmul.mubr.bf16.gmra.mrb[20].mxu1 %v1497_v38 }
 0x1b6   :  { %675 = vmatprep.mubr.bf16.mxu1 %v1633_v48 }
 0x1bd   :  { %676 = vmatmul.mubr.bf16.gmra.mrb[24].mxu1 %v1498_v39 }
 0x1be   :  { %685 = vmatprep.mubr.bf16.mxu1 %v1633_v48 }
 0x1c5   :  { %686 = vmatmul.mubr.bf16.gmra.mrb[28].mxu1 %v1499_v40 }
 0x260   :  { %v617_v49 = vpop.f32.mrb[0].mxu1 }
 0x261   :  { %v1734_v48 = vadd.f32 %v1728_v46, %v617_v49  ;;  %v619_v50 = vpop.f32.mrb[1].mxu1 }
 0x262   :  { %v1737_v51 = vadd.f32 %v1731_v47, %v619_v50  ;;  %v621_v52 = vpop.f32.mrb[2].mxu1 }
 0x263   :  { %v799_v53 = vmax.f32 %v1734_v48, 0.0  ;;  %v1741_v54 = vadd.f32 %v1728_v46, %v621_v52  ;;  %v623_v55 = vpop.f32.mrb[3].mxu1 }
 0x264   :  { %v800_v56 = vmax.f32 %v1737_v51, 0.0  ;;  %v1745_v57 = vadd.f32 %v1731_v47, %v623_v55 }
 0x265   :  { %v801_v58 = vmax.f32 %v1741_v54, 0.0 }
 0x266   :  { %v802_v59 = vmax.f32 %v1745_v57, 0.0  ;;  %v815_v60 = vadd.f32 %v800_v56, %v799_v53 }
 0x268   :  { %816 = vadd.xlane.f32.xlu0 %v815_v60  ;;  %v627_v61 = vpop.f32.mrb[4].mxu1  ;;  %v818_v2 = vadd.f32 %v802_v59, %v801_v58 }
 0x269   :  { %v1754_v62 = vadd.f32 %v1728_v46, %v627_v61  ;;  %v629_v63 = vpop.f32.mrb[5].mxu1 }
 0x26a   :  { %v1757_v0 = vadd.f32 %v1731_v47, %v629_v63  ;;  %v631_v1 = vpop.f32.mrb[6].mxu1 }
 0x26b   :  { %v803_v3 = vmax.f32 %v1754_v62, 0.0  ;;  %v1765_v4 = vadd.f32 %v1728_v46, %v631_v1  ;;  %v633_v5 = vpop.f32.mrb[7].mxu1 }
 0x26c   :  { %v804_v6 = vmax.f32 %v1757_v0, 0.0  ;;  %v1769_v7 = vadd.f32 %v1731_v47, %v633_v5  ;;  %819 = vadd.xlane.f32.xlu0 %v818_v2 }
 0x26d   :  { %v805_v8 = vmax.f32 %v1765_v4, 0.0 }
 0x26e   :  { %v806_v9 = vmax.f32 %v1769_v7, 0.0  ;;  %v821_v10 = vadd.f32 %v804_v6, %v803_v3 }
 0x270   :  { %822 = vadd.xlane.f32.xlu1 %v821_v10  ;;  %v637_v11 = vpop.f32.mrb[8].mxu1  ;;  %v824_v16 = vadd.f32 %v806_v9, %v805_v8 }
 0x271   :  { %v1778_v12 = vadd.f32 %v1728_v46, %v637_v11  ;;  %v639_v13 = vpop.f32.mrb[9].mxu1 }
 0x272   :  { %v1781_v14 = vadd.f32 %v1731_v47, %v639_v13  ;;  %v641_v15 = vpop.f32.mrb[10].mxu1 }
 0x273   :  { %v807_v17 = vmax.f32 %v1778_v12, 0.0  ;;  %v1789_v18 = vadd.f32 %v1728_v46, %v641_v15  ;;  %v643_v19 = vpop.f32.mrb[11].mxu1 }
 0x274   :  { %v808_v20 = vmax.f32 %v1781_v14, 0.0  ;;  %v1793_v21 = vadd.f32 %v1731_v47, %v643_v19  ;;  %825 = vadd.xlane.f32.xlu1 %v824_v16 }
 0x275   :  { %v809_v22 = vmax.f32 %v1789_v18, 0.0 }
 0x276   :  { %v810_v23 = vmax.f32 %v1793_v21, 0.0  ;;  %v827_v24 = vadd.f32 %v808_v20, %v807_v17 }
 0x278   :  { %828 = vadd.xlane.f32.xlu0 %v827_v24  ;;  %v647_v25 = vpop.f32.mrb[12].mxu1  ;;  %v830_v26 = vadd.f32 %v810_v23, %v809_v22 }
 0x279   :  { %v1806_v27 = vadd.f32 %v1728_v46, %v647_v25  ;;  %v649_v28 = vpop.f32.mrb[13].mxu1 }
 0x27a   :  { %v1809_v29 = vadd.f32 %v1731_v47, %v649_v28  ;;  %831 = vadd.xlane.f32.xlu1 %v830_v26  ;;  %v651_v30 = vpop.f32.mrb[14].mxu1 }
 0x27b   :  { %v811_v31 = vmax.f32 %v1806_v27, 0.0  ;;  %v1813_v32 = vadd.f32 %v1728_v46, %v651_v30  ;;  %v653_v33 = vpop.f32.mrb[15].mxu1 }
 0x27c   :  { %v812_v34 = vmax.f32 %v1809_v29, 0.0  ;;  %v1817_v35 = vadd.f32 %v1731_v47, %v653_v33 }
 0x27d   :  { %v813_v36 = vmax.f32 %v1813_v32, 0.0 }
 0x27e   :  { %v814_v37 = vmax.f32 %v1817_v35, 0.0  ;;  %v833_v38 = vadd.f32 %v812_v34, %v811_v31 }
 0x280   :  { %834 = vadd.xlane.f32.xlu0 %v833_v38  ;;  %v657_v39 = vpop.f32.mrb[16].mxu1  ;;  %v836_v40 = vadd.f32 %v814_v37, %v813_v36 }
 0x281   :  { %v1830_v41 = vadd.f32 %v1728_v46, %v657_v39  ;;  %v659_v42 = vpop.f32.mrb[17].mxu1 }
 0x282   :  { %v1833_v44 = vadd.f32 %v1731_v47, %v659_v42  ;;  %837 = vadd.xlane.f32.xlu1 %v836_v40  ;;  %v661_v49 = vpop.f32.mrb[18].mxu1 }
 0x283   :  { %v1069_v50 = vmax.f32 %v1830_v41, 0.0  ;;  %v1837_v52 = vadd.f32 %v1728_v46, %v661_v49  ;;  %v663_v55 = vpop.f32.mrb[19].mxu1 }
 0x284   :  { %v1070_v60 = vmax.f32 %v1833_v44, 0.0  ;;  %v1841_v61 = vadd.f32 %v1731_v47, %v663_v55 }
 0x285   :  { %v2262_v63 = vmax.f32 %v1837_v52, 0.0 }
 0x286   :  { %v2259_v1 = vmax.f32 %v1841_v61, 0.0  ;;  %v1085_v2 = vadd.f32 %v1070_v60, %v1069_v50 }
 0x288   :  { %1086 = vadd.xlane.f32.xlu0 %v1085_v2  ;;  %v667_v5 = vpop.f32.mrb[20].mxu1  ;;  %v1088_v10 = vadd.f32 %v2259_v1, %v2262_v63 }
 0x289   :  { %v1854_v11 = vadd.f32 %v1728_v46, %v667_v5  ;;  %v669_v13 = vpop.f32.mrb[21].mxu1 }
 0x28a   :  { %v1857_v15 = vadd.f32 %v1731_v47, %v669_v13  ;;  %1089 = vadd.xlane.f32.xlu1 %v1088_v10  ;;  %v671_v16 = vpop.f32.mrb[22].mxu1 }
 0x28b   :  { %v2256_v19 = vmax.f32 %v1854_v11, 0.0  ;;  %v1861_v24 = vadd.f32 %v1728_v46, %v671_v16  ;;  %v673_v25 = vpop.f32.mrb[23].mxu1 }
 0x28c   :  { %v2255_v26 = vmax.f32 %v1857_v15, 0.0  ;;  %v1865_v28 = vadd.f32 %v1731_v47, %v673_v25 }
 0x28d   :  { %v2254_v30 = vmax.f32 %v1861_v24, 0.0 }
 0x28e   :  { %v2253_v33 = vmax.f32 %v1865_v28, 0.0  ;;  %v1091_v38 = vadd.f32 %v2255_v26, %v2256_v19 }
 0x290   :  { %1092 = vadd.xlane.f32.xlu0 %v1091_v38  ;;  %v677_v39 = vpop.f32.mrb[24].mxu1  ;;  %v1094_v40 = vadd.f32 %v2253_v33, %v2254_v30 }
 0x291   :  { %v1878_v42 = vadd.f32 %v1728_v46, %v677_v39  ;;  %v679_v49 = vpop.f32.mrb[25].mxu1 }
 0x292   :  { %v1881_v55 = vadd.f32 %v1731_v47, %v679_v49  ;;  %1095 = vadd.xlane.f32.xlu1 %v1094_v40  ;;  %v681_v2 = vpop.f32.mrb[26].mxu1 }
 0x293   :  { %v2258_v5 = vmax.f32 %v1878_v42, 0.0  ;;  %v1885_v10 = vadd.f32 %v1728_v46, %v681_v2  ;;  %v683_v13 = vpop.f32.mrb[27].mxu1 }
 0x294   :  { %v2257_v16 = vmax.f32 %v1881_v55, 0.0  ;;  %v1889_v25 = vadd.f32 %v1731_v47, %v683_v13 }
 0x295   :  { %v2261_v38 = vmax.f32 %v1885_v10, 0.0 }
 0x296   :  { %v2260_v39 = vmax.f32 %v1889_v25, 0.0  ;;  %v1097_v40 = vadd.f32 %v2257_v16, %v2258_v5 }
 0x298   :  { %1098 = vadd.xlane.f32.xlu0 %v1097_v40  ;;  %v687_v49 = vpop.f32.mrb[28].mxu1  ;;  %v1100_v2 = vadd.f32 %v2260_v39, %v2261_v38 }
 0x299   :  { %v1902_v33 = vadd.f32 %v1728_v46, %v687_v49  ;;  %v689_v13 = vpop.f32.mrb[29].mxu1 }
 0x29a   :  { %v1905_v30 = vadd.f32 %v1731_v47, %v689_v13  ;;  %1101 = vadd.xlane.f32.xlu1 %v1100_v2  ;;  %v691_v26 = vpop.f32.mrb[30].mxu1 }
 0x29b   :  { %v1081_v19 = vmax.f32 %v1902_v33, 0.0  ;;  %v1909_v16 = vadd.f32 %v1728_v46, %v691_v26  ;;  %v693_v40 = vpop.f32.mrb[31].mxu1 }
 0x29c   :  { %v2263_v5 = vmax.f32 %v1905_v30, 0.0  ;;  %v1913_v1 = vadd.f32 %v1731_v47, %v693_v40 }
 0x29d   :  { %v1083_v49 = vmax.f32 %v1909_v16, 0.0 }
 0x29e   :  { %v1084_v39 = vmax.f32 %v1913_v1, 0.0  ;;  %v1103_v2 = vadd.f32 %v2263_v5, %v1081_v19 }
 0x2a0   :  { %1104 = vadd.xlane.f32.xlu0 %v1103_v2  ;;  %v1106_v46 = vadd.f32 %v1084_v39, %v1083_v49 }
 0x2a2   :  { %1107 = vadd.xlane.f32.xlu1 %v1106_v46 }
 0x2f5   :  { %v817_v26 = vpop.xlane.xlu0 %816 }
 0x2f6   :  { %v840_v13 = vmul.f32 0.00390625, %v817_v26 }
 0x2f8   :  { %v1927_v47 = vsub.f32 %v799_v53, %v840_v13  ;;  %v1931_v40 = vsub.f32 %v800_v56, %v840_v13 }
 0x2f9   :  { %v820_v38 = vpop.xlane.xlu0 %819 }
 0x2fa   :  { %v841_v63 = vmul.f32 0.00390625, %v820_v38  ;;  %v864_v2 = vmul.f32 %v1927_v47, %v1927_v47  ;;  %v865_v5 = vmul.f32 %v1931_v40, %v1931_v40 }
 0x2fc   :  { %v1939_v46 = vsub.f32 %v801_v58, %v841_v63  ;;  %v1943_v48 = vsub.f32 %v802_v59, %v841_v63  ;;  %v880_v53 = vadd.f32 %v865_v5, %v864_v2 }
 0x2fd   :  { %v823_v51 = vpop.xlane.xlu1 %822 }
 0x2fe   :  { %v842_v56 = vmul.f32 0.00390625, %v823_v51  ;;  %881 = vadd.xlane.f32.xlu0 %v880_v53  ;;  %v866_v38 = vmul.f32 %v1939_v46, %v1939_v46  ;;  %v867_v26 = vmul.f32 %v1943_v48, %v1943_v48 }
 0x300   :  { %v1951_v13 = vsub.f32 %v803_v3, %v842_v56  ;;  %v1955_v54 = vsub.f32 %v804_v6, %v842_v56  ;;  %v883_v57 = vadd.f32 %v867_v26, %v866_v38 }
 0x301   :  { %v826_v58 = vpop.xlane.xlu1 %825 }
 0x302   :  { %v843_v59 = vmul.f32 0.00390625, %v826_v58  ;;  %884 = vadd.xlane.f32.xlu1 %v883_v57  ;;  %v868_v63 = vmul.f32 %v1951_v13, %v1951_v13  ;;  %v869_v5 = vmul.f32 %v1955_v54, %v1955_v54 }
 0x304   :  { %v1963_v2 = vsub.f32 %v805_v8, %v843_v59  ;;  %v1967_v62 = vsub.f32 %v806_v9, %v843_v59  ;;  %v886_v0 = vadd.f32 %v869_v5, %v868_v63 }
 0x305   :  { %v829_v3 = vpop.xlane.xlu0 %828 }
 0x306   :  { %v844_v6 = vmul.f32 0.00390625, %v829_v3  ;;  %887 = vadd.xlane.f32.xlu0 %v886_v0  ;;  %v870_v53 = vmul.f32 %v1963_v2, %v1963_v2  ;;  %v871_v51 = vmul.f32 %v1967_v62, %v1967_v62 }
 0x307   :  { %v832_v56 = vpop.xlane.xlu1 %831 }
 0x308   :  { %v1975_v4 = vsub.f32 %v807_v17, %v844_v6  ;;  %v1979_v7 = vsub.f32 %v808_v20, %v844_v6  ;;  %v845_v8 = vmul.f32 0.00390625, %v832_v56  ;;  %v889_v9 = vadd.f32 %v871_v51, %v870_v53 }
 0x309   :  { %v2264_v56 = vmax.f32 %v1837_v52, 0.0 }
 0x30a   :  { %v1983_v38 = vsub.f32 %v809_v22, %v845_v8  ;;  %v1987_v26 = vsub.f32 %v810_v23, %v845_v8  ;;  %890 = vadd.xlane.f32.xlu1 %v889_v9  ;;  %v872_v12 = vmul.f32 %v1975_v4, %v1975_v4  ;;  %v873_v17 = vmul.f32 %v1979_v7, %v1979_v7 }
 0x30b   :  { %v2265_v9 = vmax.f32 %v1841_v61, 0.0 }
 0x30c   :  { %v892_v14 = vadd.f32 %v873_v17, %v872_v12  ;;  %v874_v20 = vmul.f32 %v1983_v38, %v1983_v38  ;;  %v875_v18 = vmul.f32 %v1987_v26, %v1987_v26 }
 0x30d   :  { %v835_v22 = vpop.xlane.xlu0 %834 }
 0x30e   :  { %v846_v57 = vmul.f32 0.00390625, %v835_v22  ;;  %893 = vadd.xlane.f32.xlu0 %v892_v14  ;;  %v895_v21 = vadd.f32 %v875_v18, %v874_v20  ;;  %v2266_v18 = vmax.f32 %v1854_v11, 0.0 }
 0x30f   :  { %v838_v23 = vpop.xlane.xlu1 %837 }
 0x310   :  { %v1999_v58 = vsub.f32 %v811_v31, %v846_v57  ;;  %v2003_v59 = vsub.f32 %v812_v34, %v846_v57  ;;  %v847_v63 = vmul.f32 0.00390625, %v838_v23  ;;  %896 = vadd.xlane.f32.xlu1 %v895_v21  ;;  %v2267_v57 = vmax.f32 %v1857_v15, 0.0 }
 0x312   :  { %v2007_v5 = vsub.f32 %v813_v36, %v847_v63  ;;  %v2011_v0 = vsub.f32 %v814_v37, %v847_v63  ;;  %v876_v3 = vmul.f32 %v1999_v58, %v1999_v58  ;;  %v877_v27 = vmul.f32 %v2003_v59, %v2003_v59 }
 0x313   :  { %v2268_v63 = vmax.f32 %v1861_v24, 0.0 }
 0x314   :  { %v898_v31 = vadd.f32 %v877_v27, %v876_v3  ;;  %v878_v29 = vmul.f32 %v2007_v5, %v2007_v5  ;;  %v879_v34 = vmul.f32 %v2011_v0, %v2011_v0  ;;  %v2269_v27 = vmax.f32 %v1865_v28, 0.0 }
 0x315   :  { %v1087_v32 = vpop.xlane.xlu0 %1086 }
 0x316   :  { %v1109_v36 = vmul.f32 0.00390625, %v1087_v32  ;;  %899 = vadd.xlane.f32.xlu0 %v898_v31  ;;  %v901_v6 = vadd.f32 %v879_v34, %v878_v29 }
 0x317   :  { %v1090_v35 = vpop.xlane.xlu1 %1089 }
 0x318   :  { %v2023_v37 = vsub.f32 %v1069_v50, %v1109_v36  ;;  %v2027_v53 = vsub.f32 %v1070_v60, %v1109_v36  ;;  %v1110_v51 = vmul.f32 0.00390625, %v1090_v35  ;;  %902 = vadd.xlane.f32.xlu1 %v901_v6  ;;  %v2270_v35 = vmax.f32 %v1878_v42, 0.0 }
 0x31a   :  { %v2031_v8 = vsub.f32 %v2264_v56, %v1110_v51  ;;  %v2035_v12 = vsub.f32 %v2265_v9, %v1110_v51  ;;  %v1133_v17 = vmul.f32 %v2023_v37, %v2023_v37  ;;  %v1134_v41 = vmul.f32 %v2027_v53, %v2027_v53 }
 0x31b   :  { %v2271_v56 = vmax.f32 %v1881_v55, 0.0 }
 0x31c   :  { %v1149_v50 = vadd.f32 %v1134_v41, %v1133_v17  ;;  %v1135_v44 = vmul.f32 %v2031_v8, %v2031_v8  ;;  %v1136_v60 = vmul.f32 %v2035_v12, %v2035_v12  ;;  %v2272_v41 = vmax.f32 %v1885_v10, 0.0 }
 0x31d   :  { %v1093_v52 = vpop.xlane.xlu0 %1092 }
 0x31e   :  { %v1111_v14 = vmul.f32 0.00390625, %v1093_v52  ;;  %1150 = vadd.xlane.f32.xlu0 %v1149_v50  ;;  %v1152_v20 = vadd.f32 %v1136_v60, %v1135_v44  ;;  %v2273_v44 = vmax.f32 %v1889_v25, 0.0 }
 0x31f   :  { %v1096_v61 = vpop.xlane.xlu1 %1095 }
 0x320   :  { %v2047_v22 = vsub.f32 %v2266_v18, %v1111_v14  ;;  %v2051_v21 = vsub.f32 %v2267_v57, %v1111_v14  ;;  %v1112_v23 = vmul.f32 0.00390625, %v1096_v61  ;;  %1153 = vadd.xlane.f32.xlu1 %v1152_v20 }
 0x322   :  { %v2055_v3 = vsub.f32 %v2268_v63, %v1112_v23  ;;  %v2059_v31 = vsub.f32 %v2269_v27, %v1112_v23  ;;  %v1137_v29 = vmul.f32 %v2047_v22, %v2047_v22  ;;  %v1138_v11 = vmul.f32 %v2051_v21, %v2051_v21 }
 0x323   :  { %v2274_v23 = vmax.f32 %v1905_v30, 0.0 }
 0x324   :  { %v1155_v34 = vadd.f32 %v1138_v11, %v1137_v29  ;;  %v1139_v15 = vmul.f32 %v2055_v3, %v2055_v3  ;;  %v1140_v32 = vmul.f32 %v2059_v31, %v2059_v31 }
 0x325   :  { %v1099_v24 = vpop.xlane.xlu0 %1098 }
 0x326   :  { %v1113_v36 = vmul.f32 0.00390625, %v1099_v24  ;;  %1156 = vadd.xlane.f32.xlu0 %v1155_v34  ;;  %v1158_v6 = vadd.f32 %v1140_v32, %v1139_v15 }
 0x327   :  { %v1102_v28 = vpop.xlane.xlu1 %1101 }
 0x328   :  { %v2071_v51 = vsub.f32 %v2270_v35, %v1113_v36  ;;  %v2075_v9 = vsub.f32 %v2271_v56, %v1113_v36  ;;  %v1114_v17 = vmul.f32 0.00390625, %v1102_v28  ;;  %1159 = vadd.xlane.f32.xlu1 %v1158_v6  ;;  %v740_v35 = vld [vmem:[%s2250_s4] sm:$0x3]  ;;  %s1634_s4 = smov [#allocation10]  }
 0x32a   :  { %v2079_v50 = vsub.f32 %v2272_v41, %v1114_v17  ;;  %v2083_v60 = vsub.f32 %v2273_v44, %v1114_v17  ;;  %v1141_v52 = vmul.f32 %v2071_v51, %v2071_v51  ;;  %v1142_v42 = vmul.f32 %v2075_v9, %v2075_v9  ;;  %v752_v41 = vld [vmem:[%s2251_s5] sm:$0x3]  ;;  %s1308_s5 = sshll.u32 %s1634_s4, 4  ;;  %s1309_s5 = int_to_ptr.vmem [resolvable:$true] %s1308_s5 }
 0x32b   :  { %s1598_s17 = scalar_lea.vmem %s1309_s5, 2048  ;;  %p1603_p11 = scmp.lt.s32.totalorder %s1309_s5, %s1309_s5 }
 0x32c   :  { %v1161_v14 = vadd.f32 %v1142_v42, %v1141_v52  ;;  %v1143_v55 = vmul.f32 %v2079_v50, %v2079_v50  ;;  %v1144_v20 = vmul.f32 %v2083_v60, %v2083_v60  ;;  %v2124_v52 = vrot.slane %v740_v35, %v1720_v43  ;;  %p1599_p10 = scmp.ne.s32.totalorder %s1309_s5, %s1598_s17  ;;  %p1604_p12 = scmp.lt.s32.totalorder %s1598_s17, %s1598_s17 }
 0x32d   :  { %v1105_v10 = vpop.xlane.xlu0 %1104  ;;  %v2127_v42 = vrot.slane %v740_v35, %v1725_v45 }
 0x32e   :  { %v1115_v61 = vmul.f32 0.00390625, %v1105_v10  ;;  %1162 = vadd.xlane.f32.xlu0 %v1161_v14  ;;  %v1164_v18 = vadd.f32 %v1144_v20, %v1143_v55  ;;  %v2130_v20 = vrot.slane %v752_v41, %v1720_v43  ;;  %v2133_v10 = vrot.slane %v752_v41, %v1725_v45  ;;  %p1605_p13 = por %p1604_p12, %p1603_p11 }
 0x32f   :  { %v1108_v25 = vpop.xlane.xlu1 %1107 }
 0x330   :  { %v2095_v57 = vsub.f32 %v1081_v19, %v1115_v61  ;;  %v2099_v63 = vsub.f32 %v2274_v23, %v1115_v61  ;;  %v1116_v27 = vmul.f32 0.00390625, %v1108_v25  ;;  %1165 = vadd.xlane.f32.xlu1 %v1164_v18  ;;  %p1606_p0 = pnand %p1605_p13, %p1599_p10 }
 0x332   :  { %v2103_v29 = vsub.f32 %v1083_v49, %v1116_v27  ;;  %v2107_v11 = vsub.f32 %v1084_v39, %v1116_v27  ;;  %v1145_v34 = vmul.f32 %v2095_v57, %v2095_v57  ;;  %v1146_v19 = vmul.f32 %v2099_v63, %v2099_v63 }
 0x334   :  { %v1167_v33 = vadd.f32 %v1146_v19, %v1145_v34  ;;  %v1147_v30 = vmul.f32 %v2103_v29, %v2103_v29  ;;  %v1148_v15 = vmul.f32 %v2107_v11, %v2107_v11 }
 0x336   :  { %1168 = vadd.xlane.f32.xlu0 %v1167_v33  ;;  %v1170_v16 = vadd.f32 %v1148_v15, %v1147_v30 }
 0x338   :  { %1171 = vadd.xlane.f32.xlu1 %v1170_v16 }
 0x38b   :  { %v882_v49 = vpop.xlane.xlu0 %881 }
 0x38c   :  { %v904_v1 = vmul.f32 0.00390625, %v882_v49 }
 0x38e   :  { %v912_v39 = vadd.f32 1e-05, %v904_v1 }
 0x38f   :  { %v885_v32 = vpop.xlane.xlu1 %884 }
 0x390   :  { %1500 = vrsqrt.f32 %v912_v39  ;;  %v905_v24 = vmul.f32 0.00390625, %v885_v32 }
 0x392   :  { %v913_v36 = vadd.f32 1e-05, %v905_v24 }
 0x393   :  { %v888_v6 = vpop.xlane.xlu0 %887 }
 0x394   :  { %1502 = vrsqrt.f32 %v913_v36  ;;  %v906_v28 = vmul.f32 0.00390625, %v888_v6 }
 0x396   :  { %v914_v56 = vadd.f32 1e-05, %v906_v28 }
 0x397   :  { %v891_v17 = vpop.xlane.xlu1 %890 }
 0x398   :  { %1504 = vrsqrt.f32 %v914_v56  ;;  %v907_v44 = vmul.f32 0.00390625, %v891_v17 }
 0x39a   :  { %v1501_v14 = vpop.eup %1500  ;;  %v915_v55 = vadd.f32 1e-05, %v907_v44 }
 0x39b   :  { %v928_v61 = vmul.f32 %v1501_v14, %v1927_v47  ;;  %v929_v18 = vmul.f32 %v1501_v14, %v1931_v40  ;;  %v894_v25 = vpop.xlane.xlu0 %893 }
 0x39c   :  { %1506 = vrsqrt.f32 %v915_v55  ;;  %v908_v23 = vmul.f32 0.00390625, %v894_v25 }
 0x39d   :  { %v944_v27 = vmul.f32 %v928_v61, %v2124_v52  ;;  %v945_v34 = vmul.f32 %v929_v18, %v2127_v42  ;;  %v897_v19 = vpop.xlane.xlu1 %896 }
 0x39e   :  { %v1503_v33 = vpop.eup %1502  ;;  %v916_v30 = vadd.f32 1e-05, %v908_v23  ;;  %v909_v15 = vmul.f32 0.00390625, %v897_v19 }
 0x39f   :  { %v960_v43 = vadd.f32 %v944_v27, %v2130_v20  ;;  %v961_v45 = vadd.f32 %v945_v34, %v2133_v10  ;;  %v930_v16 = vmul.f32 %v1503_v33, %v1939_v46  ;;  %v931_v47 = vmul.f32 %v1503_v33, %v1943_v48 }
 0x3a0   :  { %1508 = vrsqrt.f32 %v916_v30  ;;  %v917_v40 = vadd.f32 1e-05, %v909_v15 }
 0x3a1   :  { %v1395_v49 = vpack.c.bf16 %v961_v45, %v960_v43  ;;  %v946_v1 = vmul.f32 %v930_v16, %v2124_v52  ;;  %v947_v39 = vmul.f32 %v931_v47, %v2127_v42 }
 0x3a2   :  { %v1505_v32 = vpop.eup %1504  ;;  %1510 = vrsqrt.f32 %v917_v40 }
 0x3a3   :  { %1026 = vst [vmem:[#allocation10] sm:$0xff] %v1395_v49  ;;  %v962_v24 = vadd.f32 %v946_v1, %v2130_v20  ;;  %v963_v36 = vadd.f32 %v947_v39, %v2133_v10  ;;  %v932_v6 = vmul.f32 %v1505_v32, %v1951_v13  ;;  %v933_v46 = vmul.f32 %v1505_v32, %v1955_v54  ;;  %v900_v28 = vpop.xlane.xlu0 %899 }
 0x3a4   :  { %v910_v48 = vmul.f32 0.00390625, %v900_v28 }
 0x3a5   :  { %v1396_v35 = vpack.c.bf16 %v963_v36, %v962_v24  ;;  %v948_v56 = vmul.f32 %v932_v6, %v2124_v52  ;;  %v949_v17 = vmul.f32 %v933_v46, %v2127_v42  ;;  %v903_v41 = vpop.xlane.xlu1 %902 }
 0x3a6   :  { %v1507_v44 = vpop.eup %1506  ;;  %v918_v14 = vadd.f32 1e-05, %v910_v48  ;;  %v911_v55 = vmul.f32 0.00390625, %v903_v41 }
 0x3a7   :  { %1027 = vst [vmem:[#allocation10 + $0x8] sm:$0xff] %v1396_v35  ;;  %v964_v61 = vadd.f32 %v948_v56, %v2130_v20  ;;  %v965_v18 = vadd.f32 %v949_v17, %v2133_v10  ;;  %v934_v13 = vmul.f32 %v1507_v44, %v1963_v2  ;;  %v935_v54 = vmul.f32 %v1507_v44, %v1967_v62 }
 0x3a8   :  { %1512 = vrsqrt.f32 %v918_v14  ;;  %v919_v25 = vadd.f32 1e-05, %v911_v55 }
 0x3a9   :  { %v1397_v23 = vpack.c.bf16 %v965_v18, %v964_v61  ;;  %v950_v27 = vmul.f32 %v934_v13, %v2124_v52  ;;  %v951_v34 = vmul.f32 %v935_v54, %v2127_v42 }
 0x3aa   :  { %v1509_v19 = vpop.eup %1508  ;;  %1514 = vrsqrt.f32 %v919_v25 }
 0x3ab   :  { %1028 = vst [vmem:[#allocation10 + $0x10] sm:$0xff] %v1397_v23  ;;  %v966_v33 = vadd.f32 %v950_v27, %v2130_v20  ;;  %v967_v30 = vadd.f32 %v951_v34, %v2133_v10  ;;  %v936_v15 = vmul.f32 %v1509_v19, %v1975_v4  ;;  %v937_v2 = vmul.f32 %v1509_v19, %v1979_v7  ;;  %v1151_v43 = vpop.xlane.xlu0 %1150 }
 0x3ac   :  { %v1511_v62 = vpop.eup %1510  ;;  %v1173_v45 = vmul.f32 0.00390625, %v1151_v43 }
 0x3ad   :  { %v1398_v16 = vpack.c.bf16 %v967_v30, %v966_v33  ;;  %v952_v47 = vmul.f32 %v936_v15, %v2124_v52  ;;  %v953_v40 = vmul.f32 %v937_v2, %v2127_v42  ;;  %v938_v49 = vmul.f32 %v1511_v62, %v1983_v38  ;;  %v1154_v1 = vpop.xlane.xlu1 %1153 }
 0x3ae   :  { %v939_v39 = vmul.f32 %v1511_v62, %v1987_v26  ;;  %v1181_v32 = vadd.f32 1e-05, %v1173_v45  ;;  %v1174_v24 = vmul.f32 0.00390625, %v1154_v1 }
 0x3af   :  { %1029 = vst [vmem:[#allocation10 + $0x18] sm:$0xff] %v1398_v16  ;;  %v968_v4 = vadd.f32 %v952_v47, %v2130_v20  ;;  %v969_v7 = vadd.f32 %v953_v40, %v2133_v10  ;;  %v954_v36 = vmul.f32 %v938_v49, %v2124_v52 }
 0x3b0   :  { %v955_v6 = vmul.f32 %v939_v39, %v2127_v42  ;;  %1516 = vrsqrt.f32 %v1181_v32  ;;  %v1182_v46 = vadd.f32 1e-05, %v1174_v24 }
 0x3b1   :  { %v1399_v28 = vpack.c.bf16 %v969_v7, %v968_v4  ;;  %v970_v48 = vadd.f32 %v954_v36, %v2130_v20 }
 0x3b2   :  { %v1513_v38 = vpop.eup %1512  ;;  %v971_v35 = vadd.f32 %v955_v6, %v2133_v10  ;;  %1518 = vrsqrt.f32 %v1182_v46 }
 0x3b3   :  { %1030 = vst [vmem:[#allocation10 + $0x20] sm:$0xff] %v1399_v28  ;;  %v940_v26 = vmul.f32 %v1513_v38, %v1999_v58  ;;  %v941_v56 = vmul.f32 %v1513_v38, %v2003_v59  ;;  %v1157_v17 = vpop.xlane.xlu0 %1156 }
 0x3b4   :  { %v1515_v41 = vpop.eup %1514  ;;  %v1400_v44 = vpack.c.bf16 %v971_v35, %v970_v48  ;;  %v1175_v14 = vmul.f32 0.00390625, %v1157_v17 }
 0x3b5   :  { %v956_v55 = vmul.f32 %v940_v26, %v2124_v52  ;;  %v957_v61 = vmul.f32 %v941_v56, %v2127_v42  ;;  %v942_v18 = vmul.f32 %v1515_v41, %v2007_v5  ;;  %v943_v13 = vmul.f32 %v1515_v41, %v2011_v0  ;;  %v1160_v54 = vpop.xlane.xlu1 %1159 }
 0x3b6   :  { %1031 = vst [vmem:[#allocation10 + $0x28] sm:$0xff] %v1400_v44  ;;  %v1183_v25 = vadd.f32 1e-05, %v1175_v14  ;;  %v1176_v23 = vmul.f32 0.00390625, %v1160_v54 }
 0x3b7   :  { %v972_v58 = vadd.f32 %v956_v55, %v2130_v20  ;;  %v973_v59 = vadd.f32 %v957_v61, %v2133_v10  ;;  %v958_v27 = vmul.f32 %v942_v18, %v2124_v52  ;;  %v959_v34 = vmul.f32 %v943_v13, %v2127_v42 }
 0x3b8   :  { %1520 = vrsqrt.f32 %v1183_v25  ;;  %v1184_v19 = vadd.f32 1e-05, %v1176_v23 }
 0x3b9   :  { %v1401_v33 = vpack.c.bf16 %v973_v59, %v972_v58  ;;  %v974_v30 = vadd.f32 %v958_v27, %v2130_v20  ;;  %v975_v5 = vadd.f32 %v959_v34, %v2133_v10 }
 0x3ba   :  { %v1517_v0 = vpop.eup %1516  ;;  %1522 = vrsqrt.f32 %v1184_v19 }
 0x3bb   :  { %1032 = vst [vmem:[#allocation10 + $0x30] sm:$0xff] %v1401_v33  ;;  %v1402_v15 = vpack.c.bf16 %v975_v5, %v974_v30  ;;  %v1197_v2 = vmul.f32 %v1517_v0, %v2023_v37  ;;  %v1198_v43 = vmul.f32 %v1517_v0, %v2027_v53  ;;  %v1163_v62 = vpop.xlane.xlu0 %1162 }
 0x3bc   :  { %v1519_v45 = vpop.eup %1518  ;;  %v1177_v16 = vmul.f32 0.00390625, %v1163_v62 }
 0x3bd   :  { %1033 = vst [vmem:[#allocation10 + $0x38] sm:$0xff] %v1402_v15  ;;  %v1213_v47 = vmul.f32 %v1197_v2, %v2124_v52  ;;  %v1214_v40 = vmul.f32 %v1198_v43, %v2127_v42  ;;  %v1199_v49 = vmul.f32 %v1519_v45, %v2031_v8  ;;  %v1200_v1 = vmul.f32 %v1519_v45, %v2035_v12  ;;  %v1166_v39 = vpop.xlane.xlu1 %1165 }
 0x3be   :  { %v1185_v32 = vadd.f32 1e-05, %v1177_v16  ;;  %v1178_v24 = vmul.f32 0.00390625, %v1166_v39 }
 0x3bf   :  { %v1229_v4 = vadd.f32 %v1213_v47, %v2130_v20  ;;  %v1230_v37 = vadd.f32 %v1214_v40, %v2133_v10  ;;  %v1215_v53 = vmul.f32 %v1199_v49, %v2124_v52  ;;  %v1216_v7 = vmul.f32 %v1200_v1, %v2127_v42 }
 0x3c0   :  { %1524 = vrsqrt.f32 %v1185_v32  ;;  %v1186_v36 = vadd.f32 1e-05, %v1178_v24 }
 0x3c1   :  { %v1403_v6 = vpack.c.bf16 %v1230_v37, %v1229_v4  ;;  %v1231_v46 = vadd.f32 %v1215_v53, %v2130_v20  ;;  %v1232_v8 = vadd.f32 %v1216_v7, %v2133_v10 }
 0x3c2   :  { %v1521_v28 = vpop.eup %1520  ;;  %1526 = vrsqrt.f32 %v1186_v36 }
 0x3c3   :  { %1295 = vst [vmem:[#allocation10 + $0x40] sm:$0xff] %v1403_v6  ;;  %v1404_v12 = vpack.c.bf16 %v1232_v8, %v1231_v46  ;;  %v1201_v48 = vmul.f32 %v1521_v28, %v2047_v22  ;;  %v1202_v38 = vmul.f32 %v1521_v28, %v2051_v21  ;;  %v1169_v35 = vpop.xlane.xlu0 %1168 }
 0x3c4   :  { %v1523_v26 = vpop.eup %1522  ;;  %v1179_v56 = vmul.f32 0.00390625, %v1169_v35 }
 0x3c5   :  { %1296 = vst [vmem:[#allocation10 + $0x48] sm:$0xff] %v1404_v12  ;;  %v1217_v17 = vmul.f32 %v1201_v48, %v2124_v52  ;;  %v1218_v41 = vmul.f32 %v1202_v38, %v2127_v42  ;;  %v1203_v44 = vmul.f32 %v1523_v26, %v2055_v3  ;;  %v1204_v14 = vmul.f32 %v1523_v26, %v2059_v31  ;;  %v1172_v55 = vpop.xlane.xlu1 %1171 }
 0x3c6   :  { %v1187_v61 = vadd.f32 1e-05, %v1179_v56  ;;  %v1180_v18 = vmul.f32 0.00390625, %v1172_v55 }
 0x3c7   :  { %v1233_v13 = vadd.f32 %v1217_v17, %v2130_v20  ;;  %v1234_v22 = vadd.f32 %v1218_v41, %v2133_v10  ;;  %v1219_v21 = vmul.f32 %v1203_v44, %v2124_v52  ;;  %v1220_v54 = vmul.f32 %v1204_v14, %v2127_v42 }
 0x3c8   :  { %1528 = vrsqrt.f32 %v1187_v61  ;;  %v1188_v25 = vadd.f32 1e-05, %v1180_v18 }
 0x3c9   :  { %v1405_v23 = vpack.c.bf16 %v1234_v22, %v1233_v13  ;;  %v1235_v58 = vadd.f32 %v1219_v21, %v2130_v20  ;;  %v1236_v3 = vadd.f32 %v1220_v54, %v2133_v10 }
 0x3ca   :  { %v1525_v59 = vpop.eup %1524  ;;  %1530 = vrsqrt.f32 %v1188_v25 }
 0x3cb   :  { %1297 = vst [vmem:[#allocation10 + $0x50] sm:$0xff] %v1405_v23  ;;  %v1406_v31 = vpack.c.bf16 %v1236_v3, %v1235_v58  ;;  %v1205_v27 = vmul.f32 %v1525_v59, %v2071_v51  ;;  %v1206_v34 = vmul.f32 %v1525_v59, %v2075_v9 }
 0x3cc   :  { %v1527_v19 = vpop.eup %1526 }
 0x3cd   :  { %1298 = vst [vmem:[#allocation10 + $0x58] sm:$0xff] %v1406_v31  ;;  %v1221_v33 = vmul.f32 %v1205_v27, %v2124_v52  ;;  %v1222_v30 = vmul.f32 %v1206_v34, %v2127_v42  ;;  %v1207_v5 = vmul.f32 %v1527_v19, %v2079_v50  ;;  %v1208_v0 = vmul.f32 %v1527_v19, %v2083_v60 }
 0x3cf   :  { %v1237_v15 = vadd.f32 %v1221_v33, %v2130_v20  ;;  %v1238_v2 = vadd.f32 %v1222_v30, %v2133_v10  ;;  %v1223_v43 = vmul.f32 %v1207_v5, %v2124_v52  ;;  %v1224_v51 = vmul.f32 %v1208_v0, %v2127_v42 }
 0x3d1   :  { %v1407_v62 = vpack.c.bf16 %v1238_v2, %v1237_v15  ;;  %v1239_v9 = vadd.f32 %v1223_v43, %v2130_v20  ;;  %v1240_v45 = vadd.f32 %v1224_v51, %v2133_v10 }
 0x3d2   :  { %v1529_v16 = vpop.eup %1528 }
 0x3d3   :  { %1299 = vst [vmem:[#allocation10 + $0x60] sm:$0xff] %v1407_v62  ;;  %v1408_v47 = vpack.c.bf16 %v1240_v45, %v1239_v9  ;;  %v1209_v50 = vmul.f32 %v1529_v16, %v2095_v57  ;;  %v1210_v60 = vmul.f32 %v1529_v16, %v2099_v63 }
 0x3d4   :  { %v1531_v40 = vpop.eup %1530 }
 0x3d5   :  { %1300 = vst [vmem:[#allocation10 + $0x68] sm:$0xff] %v1408_v47  ;;  %v1225_v49 = vmul.f32 %v1209_v50, %v2124_v52  ;;  %v1226_v1 = vmul.f32 %v1210_v60, %v2127_v42  ;;  %v1211_v39 = vmul.f32 %v1531_v40, %v2103_v29  ;;  %v1212_v32 = vmul.f32 %v1531_v40, %v2107_v11 }
 0x3d7   :  { %v1241_v24 = vadd.f32 %v1225_v49, %v2130_v20  ;;  %v1242_v4 = vadd.f32 %v1226_v1, %v2133_v10  ;;  %v1227_v37 = vmul.f32 %v1211_v39, %v2124_v52  ;;  %v1228_v57 = vmul.f32 %v1212_v32, %v2127_v42 }
 0x3d9   :  { %v1409_v63 = vpack.c.bf16 %v1242_v4, %v1241_v24  ;;  %v1243_v53 = vadd.f32 %v1227_v37, %v2130_v20  ;;  %v1244_v7 = vadd.f32 %v1228_v57, %v2133_v10 }
 0x3db   :  { %1301 = vst [vmem:[#allocation10 + $0x70] sm:$0xff] %v1409_v63  ;;  %v1410_v36 = vpack.c.bf16 %v1244_v7, %v1243_v53 }
 0x3dd   :  { %1302 = vst [vmem:[#allocation10 + $0x78] sm:$0xff] %v1410_v36 }
 0x3de   :  { %1609 = shalt.err (!%p1606_p0)
}
 0x3df   :  { %s1610_s20 = scalar_lea.hbm %s2252_s6, 2048 }
 0x3e0   :  { %p1611_p1 = scmp.ne.s32.totalorder %s2252_s6, %s1610_s20  ;;  %p1614_p2 = scmp.lt.u32.totalorder %s1610_s20, %s2252_s6 }
 0x3e2   :  { %p1616_p3 = pnand %p1614_p2, %p1611_p1 }
 0x3e4   :  { %1619 = shalt.err (!%p1616_p3)
}
 0x3e5   :  { %1314 = dma.vmem_to_hbm [thread:$0]  %s1309_s5, 2048, %s2252_s6, [#allocation6], %s1627_s7, %s1627_s7, %s1628_s8  }
 0x3e6   :  { %1624 = dma.done.wait [#allocation6], 2048  }
 0x3e7   :  { %1625 = vsyncadd [#allocation6], 4294965248 }
 0x3e8   :  { %1318 = vsyncpa [#allocation5], 1 }
 0x3e9   :  { %1319 = vsyncpa [#allocation8], 1 }
 0x3ea   :  { %1320 = vsyncpa [#allocation6], 1 }

</bundles_post_ra>
